<compile_context>
chip_gen: v6e
topology: v6e:2x2x1
jax: 0.10.0
libtpu: 0.0.40
codegen_flags: <defaults>
</compile_context>

<pallas_src>
import functools

import jax
import jax.numpy as jnp
from jax.experimental import pallas as pl
from jax.experimental.pallas import tpu as pltpu


def _mixed_precision_mlp_kernel(x_ref, w1_ref, b1_ref, w2_ref, b2_ref, o_ref):
    # autocast input cast: fp32 activation tile -> bf16 matmul operand.
    x_h = x_ref[...].astype(jnp.bfloat16)

    # Linear 1: bf16 operands, fp32 MXU accumulation.
    h = jnp.dot(x_h, w1_ref[...], preferred_element_type=jnp.float32)
    h = h + b1_ref[...]                      # fp32 bias add (broadcast (1, d_mid))
    h = jnp.maximum(h, 0.0)                  # ReLU in fp32
    h_half = h.astype(jnp.bfloat16)          # autocast op-output dtype

    # Linear 2
    y = jnp.dot(h_half, w2_ref[...], preferred_element_type=jnp.float32)
    y = y + b2_ref[...]

    o_ref[...] = y.astype(o_ref.dtype)       # half-precision model output


@functools.partial(jax.jit, static_argnames=("tm",))
def mixed_precision_forward(x, w1, b1, w2, b2, *, tm=128):
    """Runs the wrapped MLP under autocast semantics via a Pallas kernel.

    x  : (B, D_in)      float32
    w1 : (D_in, D_mid)  float32,  b1: (1, D_mid) float32
    w2 : (D_mid, D_out) float32,  b2: (1, D_out) float32
    returns (B, D_out) bfloat16   (half-precision output, autocast behavior)
    """
    B, d_in = x.shape
    d_mid = w1.shape[1]
    d_out = w2.shape[1]

    # autocast "weight-cast cache": half-precision matmul weights, fp32 biases.
    w1_h = w1.astype(jnp.bfloat16)
    w2_h = w2.astype(jnp.bfloat16)
    b1_f = b1.astype(jnp.float32)
    b2_f = b2.astype(jnp.float32)

    # Pad the batch to a multiple of tm (ragged tail handled by slicing after).
    n_tiles = pl.cdiv(B, tm)
    b_pad = n_tiles * tm
    x_p = jnp.pad(x, ((0, b_pad - B), (0, 0))) if b_pad != B else x

    # Explicit VMEM budget: double-buffered fp32 x tiles + bf16 out tiles,
    # resident bf16 weights (single copy), (8,128)-padded fp32 biases, headroom.
    weight_bytes = (w1_h.size + w2_h.size) * 2
    tile_bytes = 2 * (tm * d_in * 4) + 2 * (tm * d_out * 2)
    bias_bytes = 8 * max(128, d_mid) * 4 + 8 * max(128, d_out) * 4
    vmem_limit = int(min(max(2 * (weight_bytes + tile_bytes + bias_bytes)
                             + (4 << 20), 16 << 20), 48 << 20))

    out = pl.pallas_call(
        _mixed_precision_mlp_kernel,
        out_shape=jax.ShapeDtypeStruct((b_pad, d_out), jnp.bfloat16),
        grid_spec=pltpu.PrefetchScalarGridSpec(
            num_scalar_prefetch=0,
            grid=(n_tiles,),
            in_specs=[
                # x: auto-pipelined (tm, d_in) fp32 tiles over the batch axis.
                pl.BlockSpec((tm, d_in), lambda i: (i, 0)),
                # Weights / biases: whole-array resident in VMEM (block index
                # never changes -> single copy, loaded once).
                pl.BlockSpec(memory_space=pltpu.MemorySpace.VMEM),  # w1 (bf16)
                pl.BlockSpec(memory_space=pltpu.MemorySpace.VMEM),  # b1 (fp32)
                pl.BlockSpec(memory_space=pltpu.MemorySpace.VMEM),  # w2 (bf16)
                pl.BlockSpec(memory_space=pltpu.MemorySpace.VMEM),  # b2 (fp32)
            ],
            out_specs=pl.BlockSpec((tm, d_out), lambda i: (i, 0)),
        ),
        compiler_params=pltpu.CompilerParams(
            dimension_semantics=("parallel",),   # batch axis -> megacore shard
            vmem_limit_bytes=vmem_limit,
        ),
    )(x_p, w1_h, b1_f, w2_h, b2_f)

    return out[:B] if b_pad != B else out


def reference_forward(x, w1, b1, w2, b2):
    """Pure-JAX reference of the autocast forward."""
    xh, w1h, w2h = (a.astype(jnp.bfloat16) for a in (x, w1, w2))
    h = jnp.dot(xh, w1h, preferred_element_type=jnp.float32) + b1
    h = jnp.maximum(h, 0.0).astype(jnp.bfloat16)
    y = jnp.dot(h, w2h, preferred_element_type=jnp.float32) + b2
    return y.astype(jnp.bfloat16)


if __name__ == "__main__":
    # Deterministic synthetic params (this is the "wrapped model"); no checkpoint load.
    key = jax.random.PRNGKey(0)
    k_x, k_w1, k_b1, k_w2, k_b2 = jax.random.split(key, 5)

    # Lane-dense, MXU-friendly dims (multiples of 128); batch deliberately NOT
    # a multiple of tm=128 to exercise the pad-and-slice tail path.
    batch, d_in, d_mid, d_out = 200, 128, 256, 128

    x = jax.random.normal(k_x, (batch, d_in), dtype=jnp.float32)
    w1 = jax.random.normal(k_w1, (d_in, d_mid), dtype=jnp.float32) * 0.1
    b1 = jax.random.normal(k_b1, (1, d_mid), dtype=jnp.float32) * 0.1
    w2 = jax.random.normal(k_w2, (d_mid, d_out), dtype=jnp.float32) * 0.1
    b2 = jax.random.normal(k_b2, (1, d_out), dtype=jnp.float32) * 0.1

    out = jax.block_until_ready(mixed_precision_forward(x, w1, b1, w2, b2))
    ref = jax.block_until_ready(reference_forward(x, w1, b1, w2, b2))

    assert out.shape == (batch, d_out)
    assert out.dtype == jnp.bfloat16
    assert jnp.allclose(out.astype(jnp.float32), ref.astype(jnp.float32),
                        atol=1e-1, rtol=1e-1)

    print("KERNEL_OK")
</pallas_src>

<mosaic_0001>
module attributes {stable_mosaic.version = 11 : i64} {
  func.func @_mixed_precision_mlp_kernel(%arg0: i32, %arg1: memref<128x128xf32, #tpu.memory_space<vmem>>, %arg2: memref<128x256xbf16, #tpu.memory_space<vmem>>, %arg3: memref<1x256xf32, #tpu.memory_space<vmem>>, %arg4: memref<256x128xbf16, #tpu.memory_space<vmem>>, %arg5: memref<1x128xf32, #tpu.memory_space<vmem>>, %arg6: memref<128x128xbf16, #tpu.memory_space<vmem>>) attributes {dimension_semantics = [#tpu.dimension_semantics<parallel>], iteration_bounds = array<i64: 2>, scalar_prefetch = 0 : i64, scratch_operands = 0 : i64, tpu.core_type = #tpu.core_type<tc>, window_params = [{transform_indices = @transform_0, window_bounds = array<i64: 128, 128>}, {pipeline_mode = #tpu.pipeline_mode<synchronous>, transform_indices = @transform_1, window_bounds = array<i64: 128, 256>}, {pipeline_mode = #tpu.pipeline_mode<synchronous>, transform_indices = @transform_2, window_bounds = array<i64: 1, 256>}, {pipeline_mode = #tpu.pipeline_mode<synchronous>, transform_indices = @transform_3, window_bounds = array<i64: 256, 128>}, {pipeline_mode = #tpu.pipeline_mode<synchronous>, transform_indices = @transform_4, window_bounds = array<i64: 1, 128>}, {transform_indices = @transform_5, window_bounds = array<i64: 128, 128>}]} {
    %c0 = arith.constant 0 : index
    %c0_0 = arith.constant 0 : index
    %0 = vector.load %arg1[%c0, %c0_0] : memref<128x128xf32, #tpu.memory_space<vmem>>, vector<128x128xf32>
    %1 = arith.truncf %0 : vector<128x128xf32> to vector<128x128xbf16>
    %c0_1 = arith.constant 0 : index
    %c0_2 = arith.constant 0 : index
    %2 = vector.load %arg2[%c0_1, %c0_2] : memref<128x256xbf16, #tpu.memory_space<vmem>>, vector<128x256xbf16>
    %cst = arith.constant dense<0.000000e+00> : vector<128x256xf32>
    %3 = tpu.matmul %1, %2, %cst {dimension_numbers = #tpu.dot_dimension_numbers<[1], [0], [0], [1], [0, 0, 1, 1], [], []>} : vector<128x128xbf16>, vector<128x256xbf16>, vector<128x256xf32> -> vector<128x256xf32>
    %c0_3 = arith.constant 0 : index
    %c0_4 = arith.constant 0 : index
    %4 = vector.load %arg3[%c0_3, %c0_4] : memref<1x256xf32, #tpu.memory_space<vmem>>, vector<1x256xf32>
    %5 = vector.broadcast %4 : vector<1x256xf32> to vector<128x256xf32>
    %6 = arith.addf %3, %5 : vector<128x256xf32>
    %cst_5 = arith.constant 0.000000e+00 : f32
    %7 = vector.broadcast %cst_5 : f32 to vector<128x256xf32>
    %8 = arith.maximumf %6, %7 : vector<128x256xf32>
    %9 = arith.truncf %8 : vector<128x256xf32> to vector<128x256xbf16>
    %c0_6 = arith.constant 0 : index
    %c0_7 = arith.constant 0 : index
    %10 = vector.load %arg4[%c0_6, %c0_7] : memref<256x128xbf16, #tpu.memory_space<vmem>>, vector<256x128xbf16>
    %cst_8 = arith.constant dense<0.000000e+00> : vector<128x128xf32>
    %11 = tpu.matmul %9, %10, %cst_8 {dimension_numbers = #tpu.dot_dimension_numbers<[1], [0], [0], [1], [0, 0, 1, 1], [], []>} : vector<128x256xbf16>, vector<256x128xbf16>, vector<128x128xf32> -> vector<128x128xf32>
    %c0_9 = arith.constant 0 : index
    %c0_10 = arith.constant 0 : index
    %12 = vector.load %arg5[%c0_9, %c0_10] : memref<1x128xf32, #tpu.memory_space<vmem>>, vector<1x128xf32>
    %13 = vector.broadcast %12 : vector<1x128xf32> to vector<128x128xf32>
    %14 = arith.addf %11, %13 : vector<128x128xf32>
    %15 = arith.truncf %14 : vector<128x128xf32> to vector<128x128xbf16>
    %c0_11 = arith.constant 0 : index
    %c0_12 = arith.constant 0 : index
    %16 = vector.load %arg6[%c0_11, %c0_12] : memref<128x128xbf16, #tpu.memory_space<vmem>>, vector<128x128xbf16>
    tpu.vector_store %arg6[%c0_11, %c0_12], %15 {strides = array<i32>} : memref<128x128xbf16, #tpu.memory_space<vmem>>, vector<128x128xbf16>,
    return
  }
  func.func @transform_0(%arg0: i32) -> (i32, i32) {
    %c0_i32 = arith.constant 0 : i32
    %c0_i32_0 = arith.constant 0 : i32
    return %arg0, %c0_i32 : i32, i32
  }
  func.func @transform_1(%arg0: i32) -> (i32, i32) {
    %c0_i32 = arith.constant 0 : i32
    %c0_i32_0 = arith.constant 0 : i32
    %c0_i32_1 = arith.constant 0 : i32
    return %c0_i32, %c0_i32_0 : i32, i32
  }
  func.func @transform_2(%arg0: i32) -> (i32, i32) {
    %c0_i32 = arith.constant 0 : i32
    %c0_i32_0 = arith.constant 0 : i32
    %c0_i32_1 = arith.constant 0 : i32
    return %c0_i32, %c0_i32_0 : i32, i32
  }
  func.func @transform_3(%arg0: i32) -> (i32, i32) {
    %c0_i32 = arith.constant 0 : i32
    %c0_i32_0 = arith.constant 0 : i32
    %c0_i32_1 = arith.constant 0 : i32
    return %c0_i32, %c0_i32_0 : i32, i32
  }
  func.func @transform_4(%arg0: i32) -> (i32, i32) {
    %c0_i32 = arith.constant 0 : i32
    %c0_i32_0 = arith.constant 0 : i32
    %c0_i32_1 = arith.constant 0 : i32
    return %c0_i32, %c0_i32_0 : i32, i32
  }
  func.func @transform_5(%arg0: i32) -> (i32, i32) {
    %c0_i32 = arith.constant 0 : i32
    %c0_i32_0 = arith.constant 0 : i32
    return %arg0, %c0_i32 : i32, i32
  }
}

</mosaic_0001>

<bundles_post_ra>
// kernel: mixed_precision_forward.1
= control target key start
LH: loop header
LB: loop body
LE: loop exit
PB: predicated region body
PF: predicated region fallthrough
CT: control target
= control target key end

     0   :  { %s1165_s18 = smov 0   ;;  %s1378_s0 = inlined_call_operand.vmem [shape: f32[256,128], index: 0, kind: input, shape index: {}]   ;;  %s1379_s1 = inlined_call_operand.vmem [shape: bf16[128,256], index: 1, kind: input, shape index: {}]   ;;  %s1380_s2 = inlined_call_operand.vmem [shape: f32[1,256], index: 2, kind: input, shape index: {}]   ;;  %s1381_s3 = inlined_call_operand.vmem [shape: bf16[256,128], index: 3, kind: input, shape index: {}]   ;;  %s1382_s4 = inlined_call_operand.vmem [shape: f32[1,128], index: 4, kind: input, shape index: {}]   ;;  %s1383_s5 = inlined_call_operand.vmem [shape: bf16[256,128], index: 5, kind: output, shape index: {}]  }
   0x1 LB: > { %s890_s19 = sadd.s32 4294967295, %s1132_s18   ;;  %p894_p0 = scmp.ge.s32.totalorder %s1132_s18, 1  ;;  %s1132_s18 = sphi %s1165_s18, %s15_s18  }
   0x2   : > { %p188_p1 = scmp.lt.s32.totalorder %s1132_s18, 3 }
   0x4   : > { %p189_p2 = pnand %p894_p0, %p188_p1 }
   0x5   : > { %s895_s9 = sshll.u32 (!%p189_p2), %s890_s19, 4 }
   0x6   : > { %192 = sbr.rel (%p189_p2) target bundleno = 512 (0x200), region = 40  ;;  %p217_p3 = scmp.lt.s32.totalorder (!%p189_p2), %s895_s9, 31 }
   0xb   : > { %v1086_v0 = vld [vmem:[%s1379_s1 + $0x74] ss:$8 sps:$4 sm:$0xff]   ;;  %v1088_v1 = vld [vmem:[%s1379_s1 + $0x70] ss:$8 sps:$4 sm:$0xff]   ;;  %v1134_v2 = vmov 0   ;;  %s1385_s9 = smov (!%p217_p3, %s895_s9), 31  ;;  %v271_v57 = vlaneseq }
   0xc   : > { %393 = vmatprep.mubr.bf16.mxu0 %v1134_v2  ;;  %361 = vmatprep.subr.bf16.mxu0 %v1086_v0  ;;  %v1089_v3 = vld [vmem:[%s1379_s1 + $0x64] ss:$8 sps:$4 sm:$0xff]   ;;  %v1091_v4 = vld [vmem:[%s1379_s1 + $0x60] ss:$8 sps:$4 sm:$0xff]   ;;  %v1092_v5 = vld [vmem:[%s1379_s1 + $0x54] ss:$8 sps:$4 sm:$0xff]  }
   0xd   : > { %362 = vmatpush1.bf16.msra.mxu0 %v1088_v1  ;;  %v1094_v6 = vld [vmem:[%s1379_s1 + $0x50] ss:$8 sps:$4 sm:$0xff]   ;;  %v1095_v7 = vld [vmem:[%s1379_s1 + $0x44] ss:$8 sps:$4 sm:$0xff]   ;;  %v1097_v8 = vld [vmem:[%s1379_s1 + $0x40] ss:$8 sps:$4 sm:$0xff]  }
   0xe   : > { %363 = vmatprep.subr.bf16.mxu0 %v1089_v3  ;;  %v1098_v9 = vld [vmem:[%s1379_s1 + $0x34] ss:$8 sps:$4 sm:$0xff]   ;;  %v1100_v10 = vld [vmem:[%s1379_s1 + $0x30] ss:$8 sps:$4 sm:$0xff]   ;;  %v1101_v11 = vld [vmem:[%s1379_s1 + $0x24] ss:$8 sps:$4 sm:$0xff]  }
   0xf   : > { %v1110_v12 = vld [vmem:[%s1381_s3 + $0x78] sm:$0xff]   ;;  %v1103_v13 = vld [vmem:[%s1379_s1 + $0x20] ss:$8 sps:$4 sm:$0xff]   ;;  %v1112_v16 = vld [vmem:[%s1381_s3 + $0x70] sm:$0xff]   ;;  %s896_s29 = sshll.u32 %s1385_s9, 3  ;;  %v272_v58 = vshrl.u32 %v271_v57, 7 }
  0x10   : > { %v1111_v14 = vld [vmem:[%s1381_s3 + $0x38] sm:$0xff]   ;;  %1013 = vmatprep.subr.bf16.mxu1 %v1110_v12  ;;  %v1113_v17 = vld [vmem:[%s1381_s3 + $0x30] sm:$0xff]   ;;  %v1114_v18 = vld [vmem:[%s1381_s3 + $0x68] sm:$0xff]   ;;  %s1240_s16 = scalar_lea.vmem %s1378_s0, %s896_s29  ;;  %s898_s23 = sshll.u32 %s1385_s9, 2 }
  0x11   : > { %364 = vmatpush1.bf16.msra.mxu0 %v1091_v4  ;;  %v1104_v15 = vld [vmem:[%s1379_s1 + $0x14] ss:$8 sps:$4 sm:$0xff]   ;;  %1014 = vmatpush3.bf16.msra.mxu1 %v1111_v14  ;;  %v1106_v19 = vld [vmem:[%s1379_s1 + $0x10] ss:$8 sps:$4 sm:$0xff]   ;;  %v1107_v20 = vld [vmem:[%s1379_s1 + $0x4] ss:$8 sps:$4 sm:$0xff]   ;;  %s1351_s26 = scalar_lea.vmem %s1383_s5, %s898_s23 }
  0x12   : > { %365 = vmatprep.subr.bf16.mxu0 %v1092_v5  ;;  %1015 = vmatprep.subr.bf16.mxu1 %v1112_v16  ;;  %v1115_v21 = vld [vmem:[%s1381_s3 + $0x28] sm:$0xff]   ;;  %v1116_v22 = vld [vmem:[%s1381_s3 + $0x60] sm:$0xff]   ;;  %v1118_v27 = vld [vmem:[%s1381_s3 + $0x58] sm:$0xff]   ;;  %v277_v59 = vsub.s32 1, %v272_v58  ;;  %v273_v60 = vsub.s32 0, %v272_v58 }
  0x13   : > { %v1109_v23 = vld [vmem:[%s1379_s1] ss:$8 sps:$4 sm:$0xff]   ;;  %v1119_v29 = vld [vmem:[%s1381_s3 + $0x18] sm:$0xff]   ;;  %v231_v30 = vld [vmem:[%s1240_s16 + $0x10] sm:$0xff] }
  0x14   : > { %v229_v24 = vld [vmem:[%s1240_s16] sm:$0xff]  ;;  %v230_v25 = vld [vmem:[%s1240_s16 + $0x8] sm:$0xff]  ;;  %v232_v31 = vld [vmem:[%s1240_s16 + $0x18] sm:$0xff] }
  0x15   : > { %366 = vmatpush1.bf16.msra.mxu0 %v1094_v6  ;;  %1016 = vmatpush3.bf16.msra.mxu1 %v1113_v17  ;;  %v1117_v26 = vld [vmem:[%s1381_s3 + $0x20] sm:$0xff]   ;;  %v245_v28 = vpack.c.bf16 %v230_v25, %v229_v24  ;;  %v246_v32 = vpack.c.bf16 %v232_v31, %v231_v30  ;;  %v234_v34 = vld [vmem:[%s1240_s16 + $0x28] sm:$0xff]  ;;  %v235_v36 = vld [vmem:[%s1240_s16 + $0x30] sm:$0xff] }
  0x16   : > { %367 = vmatprep.subr.bf16.mxu0 %v1095_v7  ;;  %1017 = vmatprep.subr.bf16.mxu1 %v1114_v18  ;;  %v233_v33 = vld [vmem:[%s1240_s16 + $0x20] sm:$0xff]  ;;  %v236_v37 = vld [vmem:[%s1240_s16 + $0x38] sm:$0xff]  ;;  %v238_v40 = vld [vmem:[%s1240_s16 + $0x48] sm:$0xff] }
  0x17   : > { %v247_v35 = vpack.c.bf16 %v234_v34, %v233_v33  ;;  %v248_v38 = vpack.c.bf16 %v236_v37, %v235_v36  ;;  %v237_v39 = vld [vmem:[%s1240_s16 + $0x40] sm:$0xff]  ;;  %v239_v42 = vld [vmem:[%s1240_s16 + $0x50] sm:$0xff]  ;;  %v240_v43 = vld [vmem:[%s1240_s16 + $0x58] sm:$0xff] }
  0x18   : > { %v249_v41 = vpack.c.bf16 %v238_v40, %v237_v39  ;;  %v250_v44 = vpack.c.bf16 %v240_v43, %v239_v42  ;;  %v241_v45 = vld [vmem:[%s1240_s16 + $0x60] sm:$0xff]  ;;  %v242_v46 = vld [vmem:[%s1240_s16 + $0x68] sm:$0xff]  ;;  %v243_v48 = vld [vmem:[%s1240_s16 + $0x70] sm:$0xff] }
  0x19   : > { %368 = vmatpush1.bf16.msra.mxu0 %v1097_v8  ;;  %1018 = vmatpush3.bf16.msra.mxu1 %v1115_v21  ;;  %v251_v47 = vpack.c.bf16 %v242_v46, %v241_v45  ;;  %v244_v49 = vld [vmem:[%s1240_s16 + $0x78] sm:$0xff]  ;;  %v1120_v51 = vld [vmem:[%s1381_s3 + $0x50] sm:$0xff]   ;;  %v1122_v53 = vld [vmem:[%s1381_s3 + $0x48] sm:$0xff]  }
  0x1a   : > { %369 = vmatprep.subr.bf16.mxu0 %v1098_v9  ;;  %1019 = vmatprep.subr.bf16.mxu1 %v1116_v22  ;;  %v252_v50 = vpack.c.bf16 %v244_v49, %v243_v48  ;;  %v1121_v52 = vld [vmem:[%s1381_s3 + $0x10] sm:$0xff]   ;;  %v1123_v54 = vld [vmem:[%s1381_s3 + $0x8] sm:$0xff]   ;;  %v1124_v55 = vld [vmem:[%s1381_s3 + $0x40] sm:$0xff]  }
  0x1b   : > { %v1125_v56 = vld [vmem:[%s1381_s3] sm:$0xff]  }
  0x1c   : > { %v269_v61 = vld [vmem:[%s1380_s2] sm:$0x3] }
  0x1d   : > { %370 = vmatpush1.bf16.msra.mxu0 %v1100_v10  ;;  %1020 = vmatpush3.bf16.msra.mxu1 %v1117_v26  ;;  %v1304_v63 = vrot.slane %v269_v61, %v277_v59  ;;  %v1306_v0 = vrot.slane %v269_v61, %v273_v60 }
  0x1e   : > { %371 = vmatprep.subr.bf16.mxu0 %v1101_v11  ;;  %1021 = vmatprep.subr.bf16.mxu1 %v1118_v27 }
  0x21   : > { %372 = vmatpush1.bf16.msra.mxu0 %v1103_v13  ;;  %1022 = vmatpush3.bf16.msra.mxu1 %v1119_v29 }
  0x22   : > { %373 = vmatprep.subr.bf16.mxu0 %v1104_v15  ;;  %1023 = vmatprep.subr.bf16.mxu1 %v1120_v51 }
  0x25   : > { %374 = vmatpush1.bf16.msra.mxu0 %v1106_v19  ;;  %1024 = vmatpush3.bf16.msra.mxu1 %v1121_v52 }
  0x26   : > { %375 = vmatprep.subr.bf16.mxu0 %v1107_v20  ;;  %1025 = vmatprep.subr.bf16.mxu1 %v1122_v53 }
  0x29   : > { %376 = vmatpush1.bf16.msra.mxu0 %v1109_v23  ;;  %1026 = vmatpush3.bf16.msra.mxu1 %v1123_v54 }
  0x2a   : > { %1027 = vmatprep.subr.bf16.mxu1 %v1124_v55 }
  0x2c   : > { %394 = vmatmul.mubr.bf16.vlgmr.msra.gmra.mxu0 %v245_v28 }
  0x2d   : > { %403 = vmatprep.mubr.bf16.mxu0 %v1134_v2  ;;  %1028 = vmatpush3.bf16.msra.mxu1 %v1125_v56 }
  0x34   : > { %404 = vmatmul.mubr.bf16.gmra.mxu0 %v246_v32 }
  0x35   : > { %413 = vmatprep.mubr.bf16.mxu0 %v1134_v2 }
  0x3c   : > { %414 = vmatmul.mubr.bf16.gmra.mxu0 %v247_v35 }
  0x3d   : > { %423 = vmatprep.mubr.bf16.mxu0 %v1134_v2 }
  0x44   : > { %424 = vmatmul.mubr.bf16.gmra.mxu0 %v248_v38 }
  0x45   : > { %433 = vmatprep.mubr.bf16.mxu0 %v1134_v2 }
  0x4c   : > { %434 = vmatmul.mubr.bf16.gmra.mxu0 %v249_v41 }
  0x4d   : > { %443 = vmatprep.mubr.bf16.mxu0 %v1134_v2 }
  0x54   : > { %444 = vmatmul.mubr.bf16.gmra.mxu0 %v250_v44 }
  0x55   : > { %453 = vmatprep.mubr.bf16.mxu0 %v1134_v2 }
  0x5c   : > { %454 = vmatmul.mubr.bf16.gmra.mxu0 %v251_v47 }
  0x5d   : > { %463 = vmatprep.mubr.bf16.mxu0 %v1134_v2 }
  0x64   : > { %464 = vmatmul.mubr.bf16.gmra.mxu0 %v252_v50 }
  0xec   : > { %v395_v62 = vpop.f32.mrf.mxu0 }
  0xed   : > { %v396_v5 = vadd.f32 %v395_v62, %v1306_v0 }
  0xee   : > { %v397_v1 = vpop.f32.mrf.mxu0 }
  0xef   : > { %v398_v3 = vadd.f32 %v397_v1, %v1304_v63  ;;  %v474_v12 = vmax.f32 %v396_v5, 0.0 }
  0xf0   : > { %v399_v2 = vpop.f32.mrf.mxu0 }
  0xf1   : > { %v400_v4 = vadd.f32 %v399_v2, %v1306_v0  ;;  %v475_v10 = vmax.f32 %v398_v3, 0.0 }
  0xf2   : > { %v401_v6 = vpop.f32.mrf.mxu0 }
  0xf3   : > { %v402_v7 = vadd.f32 %v401_v6, %v1304_v63  ;;  %v476_v8 = vmax.f32 %v400_v4, 0.0 }
  0xf4   : > { %v405_v9 = vpop.f32.mrf.mxu0 }
  0xf5   : > { %v477_v11 = vmax.f32 %v402_v7, 0.0  ;;  %v506_v15 = vpack.c.bf16 %v476_v8, %v474_v12  ;;  %v406_v19 = vadd.f32 %v405_v9, %v1306_v0 }
  0xf6   : > { %v407_v13 = vpop.f32.mrf.mxu0 }
  0xf7   : > { %v507_v14 = vpack.c.bf16 %v477_v11, %v475_v10  ;;  %v408_v17 = vadd.f32 %v407_v13, %v1304_v63  ;;  %v478_v26 = vmax.f32 %v406_v19, 0.0 }
  0xf8   : > { %v409_v16 = vpop.f32.mrf.mxu0 }
  0xf9   : > { %v410_v18 = vadd.f32 %v409_v16, %v1306_v0  ;;  %689 = vmatprep.mubr.bf16.mxu1 %v507_v14  ;;  %v479_v24 = vmax.f32 %v408_v17, 0.0 }
  0xfa   : > { %v411_v20 = vpop.f32.mrf.mxu0  ;;  %690 = vmatmul.mubr.bf16.vlgmr.msra.gmra.mxu1 %v506_v15 }
  0xfb   : > { %v412_v21 = vadd.f32 %v411_v20, %v1304_v63  ;;  %v480_v22 = vmax.f32 %v410_v18, 0.0 }
  0xfc   : > { %v415_v23 = vpop.f32.mrf.mxu0 }
  0xfd   : > { %v481_v25 = vmax.f32 %v412_v21, 0.0  ;;  %v508_v29 = vpack.c.bf16 %v480_v22, %v478_v26  ;;  %v416_v33 = vadd.f32 %v415_v23, %v1306_v0 }
  0xfe   : > { %v417_v27 = vpop.f32.mrf.mxu0 }
  0xff   : > { %v509_v28 = vpack.c.bf16 %v481_v25, %v479_v24  ;;  %v418_v31 = vadd.f32 %v417_v27, %v1304_v63  ;;  %v482_v40 = vmax.f32 %v416_v33, 0.0 }
 0x100   : > { %v419_v30 = vpop.f32.mrf.mxu0 }
 0x101   : > { %v420_v32 = vadd.f32 %v419_v30, %v1306_v0  ;;  %697 = vmatprep.mubr.bf16.mxu1 %v509_v28  ;;  %v483_v38 = vmax.f32 %v418_v31, 0.0 }
 0x102   : > { %v421_v34 = vpop.f32.mrf.mxu0  ;;  %698 = vmatmul.mubr.bf16.gmra.mxu1 %v508_v29 }
 0x103   : > { %v422_v35 = vadd.f32 %v421_v34, %v1304_v63  ;;  %v484_v36 = vmax.f32 %v420_v32, 0.0 }
 0x104   : > { %v425_v37 = vpop.f32.mrf.mxu0 }
 0x105   : > { %v485_v39 = vmax.f32 %v422_v35, 0.0  ;;  %v510_v43 = vpack.c.bf16 %v484_v36, %v482_v40  ;;  %v426_v47 = vadd.f32 %v425_v37, %v1306_v0 }
 0x106   : > { %v427_v41 = vpop.f32.mrf.mxu0 }
 0x107   : > { %v511_v42 = vpack.c.bf16 %v485_v39, %v483_v38  ;;  %v428_v45 = vadd.f32 %v427_v41, %v1304_v63  ;;  %v486_v54 = vmax.f32 %v426_v47, 0.0 }
 0x108   : > { %v429_v44 = vpop.f32.mrf.mxu0 }
 0x109   : > { %v430_v46 = vadd.f32 %v429_v44, %v1306_v0  ;;  %705 = vmatprep.mubr.bf16.mxu1 %v511_v42  ;;  %v487_v52 = vmax.f32 %v428_v45, 0.0 }
 0x10a   : > { %v431_v48 = vpop.f32.mrf.mxu0  ;;  %706 = vmatmul.mubr.bf16.gmra.mxu1 %v510_v43 }
 0x10b   : > { %v432_v49 = vadd.f32 %v431_v48, %v1304_v63  ;;  %v488_v50 = vmax.f32 %v430_v46, 0.0 }
 0x10c   : > { %v435_v51 = vpop.f32.mrf.mxu0 }
 0x10d   : > { %v489_v53 = vmax.f32 %v432_v49, 0.0  ;;  %v512_v57 = vpack.c.bf16 %v488_v50, %v486_v54  ;;  %v436_v61 = vadd.f32 %v435_v51, %v1306_v0 }
 0x10e   : > { %v437_v55 = vpop.f32.mrf.mxu0 }
 0x10f   : > { %v513_v56 = vpack.c.bf16 %v489_v53, %v487_v52  ;;  %v438_v59 = vadd.f32 %v437_v55, %v1304_v63  ;;  %v490_v6 = vmax.f32 %v436_v61, 0.0 }
 0x110   : > { %v439_v58 = vpop.f32.mrf.mxu0 }
 0x111   : > { %v440_v60 = vadd.f32 %v439_v58, %v1306_v0  ;;  %713 = vmatprep.mubr.bf16.mxu1 %v513_v56  ;;  %v491_v4 = vmax.f32 %v438_v59, 0.0 }
 0x112   : > { %v441_v62 = vpop.f32.mrf.mxu0  ;;  %714 = vmatmul.mubr.bf16.gmra.mxu1 %v512_v57 }
 0x113   : > { %v442_v1 = vadd.f32 %v441_v62, %v1304_v63  ;;  %v492_v2 = vmax.f32 %v440_v60, 0.0 }
 0x114   : > { %v445_v3 = vpop.f32.mrf.mxu0 }
 0x115   : > { %v493_v5 = vmax.f32 %v442_v1, 0.0  ;;  %v514_v9 = vpack.c.bf16 %v492_v2, %v490_v6  ;;  %v446_v13 = vadd.f32 %v445_v3, %v1306_v0 }
 0x116   : > { %v447_v7 = vpop.f32.mrf.mxu0 }
 0x117   : > { %v515_v8 = vpack.c.bf16 %v493_v5, %v491_v4  ;;  %v448_v11 = vadd.f32 %v447_v7, %v1304_v63  ;;  %v494_v20 = vmax.f32 %v446_v13, 0.0 }
 0x118   : > { %v449_v10 = vpop.f32.mrf.mxu0 }
 0x119   : > { %v450_v12 = vadd.f32 %v449_v10, %v1306_v0  ;;  %721 = vmatprep.mubr.bf16.mxu1 %v515_v8  ;;  %v495_v18 = vmax.f32 %v448_v11, 0.0 }
 0x11a   : > { %v451_v14 = vpop.f32.mrf.mxu0  ;;  %722 = vmatmul.mubr.bf16.gmra.mxu1 %v514_v9 }
 0x11b   : > { %v452_v15 = vadd.f32 %v451_v14, %v1304_v63  ;;  %v496_v16 = vmax.f32 %v450_v12, 0.0 }
 0x11c   : > { %v455_v17 = vpop.f32.mrf.mxu0 }
 0x11d   : > { %v497_v19 = vmax.f32 %v452_v15, 0.0  ;;  %v516_v23 = vpack.c.bf16 %v496_v16, %v494_v20  ;;  %v456_v27 = vadd.f32 %v455_v17, %v1306_v0 }
 0x11e   : > { %v457_v21 = vpop.f32.mrf.mxu0 }
 0x11f   : > { %v517_v22 = vpack.c.bf16 %v497_v19, %v495_v18  ;;  %v458_v25 = vadd.f32 %v457_v21, %v1304_v63  ;;  %v498_v34 = vmax.f32 %v456_v27, 0.0 }
 0x120   : > { %v459_v24 = vpop.f32.mrf.mxu0 }
 0x121   : > { %v460_v26 = vadd.f32 %v459_v24, %v1306_v0  ;;  %729 = vmatprep.mubr.bf16.mxu1 %v517_v22  ;;  %v499_v32 = vmax.f32 %v458_v25, 0.0 }
 0x122   : > { %v461_v28 = vpop.f32.mrf.mxu0  ;;  %730 = vmatmul.mubr.bf16.gmra.mxu1 %v516_v23 }
 0x123   : > { %v462_v29 = vadd.f32 %v461_v28, %v1304_v63  ;;  %v500_v30 = vmax.f32 %v460_v26, 0.0 }
 0x124   : > { %v465_v31 = vpop.f32.mrf.mxu0 }
 0x125   : > { %v501_v33 = vmax.f32 %v462_v29, 0.0  ;;  %v518_v37 = vpack.c.bf16 %v500_v30, %v498_v34  ;;  %v466_v41 = vadd.f32 %v465_v31, %v1306_v0 }
 0x126   : > { %v467_v35 = vpop.f32.mrf.mxu0 }
 0x127   : > { %v519_v36 = vpack.c.bf16 %v501_v33, %v499_v32  ;;  %v468_v39 = vadd.f32 %v467_v35, %v1304_v63  ;;  %v502_v47 = vmax.f32 %v466_v41, 0.0 }
 0x128   : > { %v469_v38 = vpop.f32.mrf.mxu0 }
 0x129   : > { %v470_v40 = vadd.f32 %v469_v38, %v1306_v0  ;;  %737 = vmatprep.mubr.bf16.mxu1 %v519_v36  ;;  %v503_v45 = vmax.f32 %v468_v39, 0.0  ;;  %v1343_v0 = vld [vmem:[%s1382_s4] ss:$0 sm:$0xff] }
 0x12a   : > { %v471_v42 = vpop.f32.mrf.mxu0  ;;  %738 = vmatmul.mubr.bf16.gmra.mxu1 %v518_v37 }
 0x12b   : > { %v472_v43 = vadd.f32 %v471_v42, %v1304_v63  ;;  %v504_v44 = vmax.f32 %v470_v40, 0.0 }
 0x12d   : > { %v505_v46 = vmax.f32 %v472_v43, 0.0  ;;  %v520_v49 = vpack.c.bf16 %v504_v44, %v502_v47 }
 0x12f   : > { %v521_v48 = vpack.c.bf16 %v505_v46, %v503_v45 }
 0x131   : > { %745 = vmatprep.mubr.bf16.mxu1 %v521_v48 }
 0x132   : > { %746 = vmatmul.mubr.bf16.gmra.mxu1 %v520_v49 }
 0x1ba   : > { %v1029_v50 = vpop.f32.mrf.mxu1 }
 0x1bc   : > { %v1030_v51 = vpop.f32.mrf.mxu1 }
 0x1bd   : > { %v1031_v53 = vadd.f32 %v1030_v51, %v1029_v50 }
 0x1be   : > { %v1032_v52 = vpop.f32.mrf.mxu1 }
 0x1bf   : > { %v692_v56 = vadd.f32 %v1031_v53, %v1343_v0 }
 0x1c0   : > { %v1033_v54 = vpop.f32.mrf.mxu1 }
 0x1c1   : > { %v1034_v63 = vadd.f32 %v1033_v54, %v1032_v52 }
 0x1c2   : > { %v1035_v55 = vpop.f32.mrf.mxu1 }
 0x1c3   : > { %v695_v57 = vadd.f32 %v1034_v63, %v1343_v0 }
 0x1c4   : > { %v1036_v58 = vpop.f32.mrf.mxu1 }
 0x1c5   : > { %v969_v59 = vpack.c.bf16 %v695_v57, %v692_v56  ;;  %v1037_v61 = vadd.f32 %v1036_v58, %v1035_v55 }
 0x1c6   : > { %v1038_v60 = vpop.f32.mrf.mxu1 }
 0x1c7   : > { %970 = vst [vmem:[%s1351_s26] sm:$0xff] %v969_v59   ;;  %v700_v3 = vadd.f32 %v1037_v61, %v1343_v0 }
 0x1c8   : > { %v1039_v62 = vpop.f32.mrf.mxu1 }
 0x1c9   : > { %v1040_v1 = vadd.f32 %v1039_v62, %v1038_v60 }
 0x1ca   : > { %v1041_v2 = vpop.f32.mrf.mxu1 }
 0x1cb   : > { %v703_v4 = vadd.f32 %v1040_v1, %v1343_v0 }
 0x1cc   : > { %v1042_v5 = vpop.f32.mrf.mxu1 }
 0x1cd   : > { %v974_v6 = vpack.c.bf16 %v703_v4, %v700_v3  ;;  %v1043_v8 = vadd.f32 %v1042_v5, %v1041_v2 }
 0x1ce   : > { %v1044_v7 = vpop.f32.mrf.mxu1 }
 0x1cf   : > { %1006 = vst [vmem:[%s1351_s26 + $0x8] sm:$0xff] %v974_v6   ;;  %v708_v12 = vadd.f32 %v1043_v8, %v1343_v0 }
 0x1d0   : > { %v1045_v9 = vpop.f32.mrf.mxu1 }
 0x1d1   : > { %v1046_v10 = vadd.f32 %v1045_v9, %v1044_v7 }
 0x1d2   : > { %v1047_v11 = vpop.f32.mrf.mxu1 }
 0x1d3   : > { %v711_v13 = vadd.f32 %v1046_v10, %v1343_v0 }
 0x1d4   : > { %v1048_v14 = vpop.f32.mrf.mxu1 }
 0x1d5   : > { %v979_v15 = vpack.c.bf16 %v711_v13, %v708_v12  ;;  %v1049_v17 = vadd.f32 %v1048_v14, %v1047_v11 }
 0x1d6   : > { %v1050_v16 = vpop.f32.mrf.mxu1 }
 0x1d7   : > { %1007 = vst [vmem:[%s1351_s26 + $0x10] sm:$0xff] %v979_v15   ;;  %v716_v21 = vadd.f32 %v1049_v17, %v1343_v0 }
 0x1d8   : > { %v1051_v18 = vpop.f32.mrf.mxu1 }
 0x1d9   : > { %v1052_v19 = vadd.f32 %v1051_v18, %v1050_v16 }
 0x1da   : > { %v1053_v20 = vpop.f32.mrf.mxu1 }
 0x1db   : > { %v719_v22 = vadd.f32 %v1052_v19, %v1343_v0 }
 0x1dc   : > { %v1054_v23 = vpop.f32.mrf.mxu1 }
 0x1dd   : > { %v984_v24 = vpack.c.bf16 %v719_v22, %v716_v21  ;;  %v1055_v26 = vadd.f32 %v1054_v23, %v1053_v20 }
 0x1de   : > { %v1056_v25 = vpop.f32.mrf.mxu1 }
 0x1df   : > { %1008 = vst [vmem:[%s1351_s26 + $0x18] sm:$0xff] %v984_v24   ;;  %v724_v30 = vadd.f32 %v1055_v26, %v1343_v0 }
 0x1e0   : > { %v1057_v27 = vpop.f32.mrf.mxu1 }
 0x1e1   : > { %v1058_v28 = vadd.f32 %v1057_v27, %v1056_v25 }
 0x1e2   : > { %v1059_v29 = vpop.f32.mrf.mxu1 }
 0x1e3   : > { %v727_v31 = vadd.f32 %v1058_v28, %v1343_v0 }
 0x1e4   : > { %v1060_v32 = vpop.f32.mrf.mxu1 }
 0x1e5   : > { %v989_v33 = vpack.c.bf16 %v727_v31, %v724_v30  ;;  %v1061_v35 = vadd.f32 %v1060_v32, %v1059_v29 }
 0x1e6   : > { %v1062_v34 = vpop.f32.mrf.mxu1 }
 0x1e7   : > { %1009 = vst [vmem:[%s1351_s26 + $0x20] sm:$0xff] %v989_v33   ;;  %v732_v39 = vadd.f32 %v1061_v35, %v1343_v0 }
 0x1e8   : > { %v1063_v36 = vpop.f32.mrf.mxu1 }
 0x1e9   : > { %v1064_v37 = vadd.f32 %v1063_v36, %v1062_v34 }
 0x1ea   : > { %v1065_v38 = vpop.f32.mrf.mxu1 }
 0x1eb   : > { %v735_v40 = vadd.f32 %v1064_v37, %v1343_v0 }
 0x1ec   : > { %v1066_v41 = vpop.f32.mrf.mxu1 }
 0x1ed   : > { %v994_v42 = vpack.c.bf16 %v735_v40, %v732_v39  ;;  %v1067_v44 = vadd.f32 %v1066_v41, %v1065_v38 }
 0x1ee   : > { %v1068_v43 = vpop.f32.mrf.mxu1 }
 0x1ef   : > { %1010 = vst [vmem:[%s1351_s26 + $0x28] sm:$0xff] %v994_v42   ;;  %v740_v48 = vadd.f32 %v1067_v44, %v1343_v0 }
 0x1f0   : > { %v1069_v45 = vpop.f32.mrf.mxu1 }
 0x1f1   : > { %v1070_v46 = vadd.f32 %v1069_v45, %v1068_v43 }
 0x1f2   : > { %v1071_v47 = vpop.f32.mrf.mxu1 }
 0x1f3   : > { %v743_v49 = vadd.f32 %v1070_v46, %v1343_v0 }
 0x1f4   : > { %v1072_v50 = vpop.f32.mrf.mxu1 }
 0x1f5   : > { %v999_v51 = vpack.c.bf16 %v743_v49, %v740_v48  ;;  %v1073_v53 = vadd.f32 %v1072_v50, %v1071_v47 }
 0x1f6   : > { %v1074_v52 = vpop.f32.mrf.mxu1 }
 0x1f7   : > { %1011 = vst [vmem:[%s1351_s26 + $0x30] sm:$0xff] %v999_v51   ;;  %v748_v55 = vadd.f32 %v1073_v53, %v1343_v0 }
 0x1f8   : > { %v1075_v54 = vpop.f32.mrf.mxu1 }
 0x1f9   : > { %v1076_v63 = vadd.f32 %v1075_v54, %v1074_v52 }
 0x1fb   : > { %v751_v56 = vadd.f32 %v1076_v63, %v1343_v0 }
 0x1fd   : > { %v1004_v57 = vpack.c.bf16 %v751_v56, %v748_v55 }
 0x1ff   : > { %1012 = vst [vmem:[%s1351_s26 + $0x38] sm:$0xff] %v1004_v57  }
 0x200 PF: > { %s15_s18 = sadd.s32 1, %s1132_s18  }
 0x201   : > { %p12_p4 = scmp.ge.s32.totalorder %s15_s18, 4  }
 0x203   :  { %14 = sbr.rel (!%p12_p4) target bundleno = 1 (0x1), region = 70 }

</bundles_post_ra>
